<compile_context>
chip_gen: v7x
topology: tpu7x:2x2x1
jax: 0.10.0
libtpu: 0.0.40
codegen_flags: <defaults>
</compile_context>

<pallas_src>
import functools

import jax
import jax.numpy as jnp
from jax.experimental import pallas as pl
from jax.experimental.pallas import tpu as pltpu


def _vq_kernel(x_ref, w_ref, wsq_ref, q_ref, idx_ref, sse_ref, cnt_ref, *,
               hw, tile, has_pad, dist_dtype):
    # TODO(synk): forward-only; straight-through / detach gradient structure
    # of the torch module would need a custom VJP.
    t = pl.program_id(1)
    bb = x_ref.shape[0]
    K = w_ref.shape[0]
    T = x_ref.shape[2]

    w = w_ref[...]                                   # (K, D) f32, resident
    wsq_half = wsq_ref[...]                          # (K, 1) f32 = 0.5*||w_k||^2
    w_d = w.astype(dist_dtype)

    # Per-(b, t)-block partial statistics: zero once, accumulate over sub-batch.
    sse_ref[...] = jnp.zeros_like(sse_ref)
    cnt_ref[...] = jnp.zeros_like(cnt_ref)

    if has_pad:
        # cheap (1, T) mask; the expensive masked multiplies only run on the
        # last spatial tile (see pl.when below).
        col = t * tile + jax.lax.broadcasted_iota(jnp.int32, (1, T), 1)
        valid = (col < hw).astype(jnp.float32)       # (1, T)
        is_last_t = t == pl.num_programs(1) - 1

    row = jax.lax.broadcasted_iota(jnp.int32, (K, T), 0)   # (K, T)

    for i in range(bb):                              # static unroll over sub-batch
        x = x_ref[i]                                 # (D, T), model dtype, lanes = spatial
        x32 = x.astype(jnp.float32)
        x_d = x.astype(dist_dtype)

        # distance up to a per-column constant (argmin-invariant):
        #   d'[k, n] = 0.5*||w_k||^2 - <w_k, x_n>
        xw = jnp.dot(w_d, x_d, preferred_element_type=jnp.float32)   # (K, T) MXU
        d = wsq_half - xw                                            # (K, T)

        # argmin over the K (sublane) axis, first-occurrence tie break.
        dmin = jnp.min(d, axis=0, keepdims=True)                     # (1, T)
        idx = jnp.min(jnp.where(d == dmin, row, jnp.int32(K)),
                      axis=0, keepdims=True)                         # (1, T) int32
        enc = (row == idx).astype(jnp.float32)                       # (K, T) one-hot (VMEM only)

        # quantized block e = w^T @ onehot -> (D, T), kept f32 internally
        e = jax.lax.dot_general(w, enc, (((0,), (0,)), ((), ())),
                                preferred_element_type=jnp.float32)  # (D, T)

        q_ref[i] = e.astype(q_ref.dtype)             # store in model dtype (NCHW layout)
        idx_ref[i] = idx

        diff = e - x32                               # (D, T)
        if has_pad:
            @pl.when(is_last_t)
            def _(diff=diff, enc=enc):
                sse_ref[0, 0] += jnp.sum(diff * diff * valid, keepdims=True)
                cnt_ref[0, 0] += jnp.sum(enc * valid, axis=1, keepdims=True)

            @pl.when(jnp.logical_not(is_last_t))
            def _(diff=diff, enc=enc):
                sse_ref[0, 0] += jnp.sum(diff * diff, keepdims=True)
                cnt_ref[0, 0] += jnp.sum(enc, axis=1, keepdims=True)
        else:
            sse_ref[0, 0] += jnp.sum(diff * diff, keepdims=True)
            cnt_ref[0, 0] += jnp.sum(enc, axis=1, keepdims=True)


def vector_quantizer_forward(inp_nchw, emb_weight, commitment_cost, *,
                             tile_hw=None, batch_block=None,
                             distance_dtype=jnp.float32,
                             return_encodings=True):
    """Returns (loss, quantized_nchw, perplexity, encodings) like the torch module.

    distance_dtype=jnp.bfloat16 uses the bf16 MXU rate for the distance matmul
    (recommended on v5e; may flip the argmin on float near-ties).
    return_encodings=False skips the dense (N, K) one-hot materialization.
    """
    B, C, H, W = inp_nchw.shape
    K, D = emb_weight.shape
    assert C == D, "channel dim must equal embedding dim"

    HW = H * W
    hw128 = ((HW + 127) // 128) * 128
    in_dtype = inp_nchw.dtype
    x_bytes = jnp.dtype(in_dtype).itemsize
    q_bytes = x_bytes

    # ---- VMEM budget, re-derived per chip (64 MiB physical on v7x, 128 on v5e/v6e)
    try:
        vmem_cap = int(pltpu.get_tpu_info().vmem_capacity_bytes)
    except Exception:
        vmem_cap = 64 * 1024 * 1024          # conservative (v7x per-TC)
    budget = int(vmem_cap * 0.6)

    def vmem_est(bb, T):
        io = 2 * bb * (C * T * (x_bytes + q_bytes) + T * 4)     # double-buffered x/q/idx blocks
        resident = 2 * (K * D * 4 + K * 4)                      # codebook + 0.5*||w||^2
        interm = bb * (2 * K * T + 3 * D * T) * 4               # d/enc + e/diff intermediates (f32)
        stats = 2 * (K + 1) * 4
        return io + resident + interm + stats

    # ---- lane tile: as large as the VMEM budget (and spatial extent) allows
    T = tile_hw if tile_hw is not None else 8192
    T = max(128, min((int(T) // 128) * 128, hw128))
    while vmem_est(1, T) > budget and T > 128:
        T -= 128

    # ---- batch sub-block: amortize ~0.35us/step overhead (target >= ~1 MiB per step)
    if batch_block is None:
        want = max(1, -(-(1 << 20) // max(1, C * T * (x_bytes + q_bytes))))
        bb = 1
        for cand in range(1, B + 1):
            if B % cand == 0 and cand <= want and vmem_est(cand, T) <= budget:
                bb = cand
    else:
        bb = int(batch_block)
        assert B % bb == 0, "batch_block must divide batch size"
    nb = B // bb

    HW_pad = ((HW + T - 1) // T) * T
    num_t = HW_pad // T
    has_pad = HW_pad != HW

    x = inp_nchw.reshape(B, C, HW)                   # keep model dtype; no transpose
    if has_pad:
        x = jnp.pad(x, ((0, 0), (0, 0), (0, HW_pad - HW)))

    w = emb_weight.astype(jnp.float32)
    wsq_half = 0.5 * jnp.sum(w * w, axis=1, keepdims=True)      # (K, 1), hoisted

    kernel = functools.partial(_vq_kernel, hw=HW, tile=T, has_pad=has_pad,
                               dist_dtype=distance_dtype)

    vmem_limit = int(min(vmem_cap * 0.9, max(vmem_est(bb, T) * 2, 16 << 20)))

    # Note: the resident codebook/wsq specs could additionally use
    # pipeline_mode=pl.Buffered(1) to halve their (already small) VMEM
    # footprint; their block index never changes so no re-DMA occurs either way.
    q, idx, sse_p, cnt_p = pl.pallas_call(
        kernel,
        out_shape=(
            jax.ShapeDtypeStruct((B, C, HW_pad), in_dtype),      # quantized, NCHW layout
            jax.ShapeDtypeStruct((B, 1, HW_pad), jnp.int32),     # code indices
            jax.ShapeDtypeStruct((nb, num_t, 1, 1), jnp.float32),    # per-block SSE partials
            jax.ShapeDtypeStruct((nb, num_t, K, 1), jnp.float32),    # per-block code counts
        ),
        grid_spec=pltpu.PrefetchScalarGridSpec(
            num_scalar_prefetch=0,
            grid=(nb, num_t),
            in_specs=[
                pl.BlockSpec((bb, C, T), lambda b, t: (b, 0, t)),    # input columns
                pl.BlockSpec((K, D), lambda b, t: (0, 0)),           # full codebook, resident
                pl.BlockSpec((K, 1), lambda b, t: (0, 0)),           # 0.5*||w||^2, resident
            ],
            out_specs=[
                pl.BlockSpec((bb, C, T), lambda b, t: (b, 0, t)),    # quantized columns
                pl.BlockSpec((bb, 1, T), lambda b, t: (b, 0, t)),    # indices (lane-dense)
                pl.BlockSpec((1, 1, 1, 1), lambda b, t: (b, t, 0, 0)),
                pl.BlockSpec((1, 1, K, 1), lambda b, t: (b, t, 0, 0)),
            ],
        ),
        compiler_params=pltpu.CompilerParams(
            # fully independent grid: lets v7x shard across both TensorCores
            dimension_semantics=("parallel", "parallel"),
            vmem_limit_bytes=vmem_limit,
        ),
    )(x, w, wsq_half)

    # tiny final reductions in the wrapper (enables the parallel grid above)
    N = B * HW
    total_sse = jnp.sum(sse_p)
    counts = jnp.sum(cnt_p, axis=(0, 1))[:, 0]                   # (K,)
    mse = total_sse / jnp.float32(N * D)
    # forward value: mse(e, x.detach()) + c * mse(e.detach(), x) == (1+c)*mse
    loss = (1.0 + float(commitment_cost)) * mse
    avg = counts / jnp.float32(N)
    perplexity = jnp.exp(-jnp.sum(avg * jnp.log(avg + 1e-10)))

    quantized_nchw = q[:, :, :HW].reshape(B, C, H, W)
    if return_encodings:
        # dense one-hot encodings, row order (b, h, w) == torch's NHWC flatten order
        idx_flat = idx[:, 0, :HW].reshape(-1)
        encodings = jax.nn.one_hot(idx_flat, K, dtype=jnp.float32)
    else:
        encodings = None
    return loss, quantized_nchw, perplexity, encodings


def _reference(inp_nchw, emb_weight, commitment_cost):
    """Pure-JAX reference matching the torch forward semantics."""
    B, C, H, W = inp_nchw.shape
    K, D = emb_weight.shape
    x = jnp.transpose(inp_nchw, (0, 2, 3, 1))
    flat = x.reshape(-1, D)
    d = (jnp.sum(flat ** 2, axis=1, keepdims=True)
         + jnp.sum(emb_weight ** 2, axis=1)
         - 2.0 * flat @ emb_weight.T)
    idx = jnp.argmin(d, axis=1)
    enc = jax.nn.one_hot(idx, K, dtype=jnp.float32)
    e = (enc @ emb_weight).reshape(x.shape)
    mse = jnp.mean((e - x) ** 2)
    loss = mse + commitment_cost * mse
    avg = jnp.mean(enc, axis=0)
    perp = jnp.exp(-jnp.sum(avg * jnp.log(avg + 1e-10)))
    return loss, jnp.transpose(e, (0, 3, 1, 2)), perp, enc


if __name__ == "__main__":
    # Module hyperparameters (small, synthetic).
    num_emb, emb_dim, commitment_cost = 16, 4, 0.25
    B, H, W = 2, 16, 16

    key = jax.random.PRNGKey(0)
    k_emb, k_inp = jax.random.split(key)

    # nn.Embedding(num_emb, emb_dim).weight.uniform_(-1/num_emb, 1/num_emb)
    emb_weight = jax.random.uniform(
        k_emb, (num_emb, emb_dim), dtype=jnp.float32,
        minval=-1.0 / num_emb, maxval=1.0 / num_emb)

    x = jax.random.normal(k_inp, (B, emb_dim, H, W), dtype=jnp.float32)

    loss, quantized, perplexity, encodings = vector_quantizer_forward(
        x, emb_weight, commitment_cost)
    jax.block_until_ready((loss, quantized, perplexity, encodings))

    # sanity-check against pure-JAX reference
    r_loss, r_q, r_perp, r_enc = _reference(x, emb_weight, commitment_cost)
    assert jnp.allclose(loss, r_loss, atol=1e-5)
    assert jnp.allclose(quantized, r_q, atol=1e-5)
    assert jnp.allclose(perplexity, r_perp, atol=1e-4)
    assert jnp.allclose(encodings, r_enc, atol=1e-6)

    print("KERNEL_OK")
</pallas_src>

<mosaic_0001>
module attributes {stable_mosaic.version = 11 : i64} {
  func.func @_vq_kernel(%arg0: i32, %arg1: i32, %arg2: memref<2x4x256xf32, #tpu.memory_space<vmem>>, %arg3: memref<16x4xf32, #tpu.memory_space<vmem>>, %arg4: memref<16x1xf32, #tpu.memory_space<vmem>>, %arg5: memref<2x4x256xf32, #tpu.memory_space<vmem>>, %arg6: memref<2x1x256xi32, #tpu.memory_space<vmem>>, %arg7: memref<1x1x1x1xf32, #tpu.memory_space<vmem>>, %arg8: memref<1x1x16x1xf32, #tpu.memory_space<vmem>>) attributes {dimension_semantics = [#tpu.dimension_semantics<parallel>, #tpu.dimension_semantics<parallel>], iteration_bounds = array<i64: 1, 1>, scalar_prefetch = 0 : i64, scratch_operands = 0 : i64, tpu.core_type = #tpu.core_type<tc>, window_params = [{transform_indices = @transform_0, window_bounds = array<i64: 2, 4, 256>}, {pipeline_mode = #tpu.pipeline_mode<synchronous>, transform_indices = @transform_1, window_bounds = array<i64: 16, 4>}, {pipeline_mode = #tpu.pipeline_mode<synchronous>, transform_indices = @transform_2, window_bounds = array<i64: 16, 1>}, {transform_indices = @transform_3, window_bounds = array<i64: 2, 4, 256>}, {transform_indices = @transform_4, window_bounds = array<i64: 2, 1, 256>}, {transform_indices = @transform_5, window_bounds = array<i64: 1, 1, 1, 1>}, {transform_indices = @transform_6, window_bounds = array<i64: 1, 1, 16, 1>}]} {
    %c0 = arith.constant 0 : index
    %c0_0 = arith.constant 0 : index
    %0 = vector.load %arg3[%c0, %c0_0] : memref<16x4xf32, #tpu.memory_space<vmem>>, vector<16x4xf32>
    %c0_1 = arith.constant 0 : index
    %c0_2 = arith.constant 0 : index
    %1 = vector.load %arg4[%c0_1, %c0_2] : memref<16x1xf32, #tpu.memory_space<vmem>>, vector<16x1xf32>
    %cst = arith.constant 0.000000e+00 : f32
    %2 = vector.broadcast %cst : f32 to vector<1x1x1x1xf32>
    %c0_3 = arith.constant 0 : index
    %c0_4 = arith.constant 0 : index
    %c0_5 = arith.constant 0 : index
    %c0_6 = arith.constant 0 : index
    %3 = vector.load %arg7[%c0_3, %c0_4, %c0_5, %c0_6] : memref<1x1x1x1xf32, #tpu.memory_space<vmem>>, vector<1x1x1x1xf32>
    tpu.vector_store %arg7[%c0_3, %c0_4, %c0_5, %c0_6], %2 {strides = array<i32>} : memref<1x1x1x1xf32, #tpu.memory_space<vmem>>, vector<1x1x1x1xf32>,
    %cst_7 = arith.constant 0.000000e+00 : f32
    %4 = vector.broadcast %cst_7 : f32 to vector<1x1x16x1xf32>
    %c0_8 = arith.constant 0 : index
    %c0_9 = arith.constant 0 : index
    %c0_10 = arith.constant 0 : index
    %c0_11 = arith.constant 0 : index
    %5 = vector.load %arg8[%c0_8, %c0_9, %c0_10, %c0_11] : memref<1x1x16x1xf32, #tpu.memory_space<vmem>>, vector<1x1x16x1xf32>
    tpu.vector_store %arg8[%c0_8, %c0_9, %c0_10, %c0_11], %4 {strides = array<i32>} : memref<1x1x16x1xf32, #tpu.memory_space<vmem>>, vector<1x1x16x1xf32>,
    %6 = tpu.iota {dimensions = array<i32: 0>} : vector<16x256xi32>
    %c0_12 = arith.constant 0 : index
    %c0_13 = arith.constant 0 : index
    %c0_14 = arith.constant 0 : index
    %7 = vector.load %arg2[%c0_12, %c0_13, %c0_14] : memref<2x4x256xf32, #tpu.memory_space<vmem>>, vector<1x4x256xf32>
    %8 = vector.shape_cast %7 : vector<1x4x256xf32> to vector<4x256xf32>
    %cst_15 = arith.constant dense<0.000000e+00> : vector<16x256xf32>
    %9 = tpu.matmul %0, %8, %cst_15 {dimension_numbers = #tpu.dot_dimension_numbers<[1], [0], [0], [1], [0, 0, 1, 1], [], []>} : vector<16x4xf32>, vector<4x256xf32>, vector<16x256xf32> -> vector<16x256xf32>
    %10 = vector.broadcast %1 : vector<16x1xf32> to vector<16x256xf32>
    %11 = arith.subf %10, %9 : vector<16x256xf32>
    %cst_16 = arith.constant dense<0x7F800000> : vector<256xf32>
    %12 = vector.multi_reduction <minimumf>, %11, %cst_16 [0] : vector<16x256xf32> to vector<256xf32>
    %13 = vector.shape_cast %12 : vector<256xf32> to vector<1x256xf32>
    %14 = vector.broadcast %13 : vector<1x256xf32> to vector<16x256xf32>
    %15 = arith.cmpf oeq, %11, %14 : vector<16x256xf32>
    %c16_i32 = arith.constant 16 : i32
    %16 = vector.broadcast %c16_i32 : i32 to vector<16x256xi32>
    %17 = arith.select %15, %6, %16 : vector<16x256xi1>, vector<16x256xi32>
    %cst_17 = arith.constant dense<2147483647> : vector<256xi32>
    %18 = vector.multi_reduction <minsi>, %17, %cst_17 [0] : vector<16x256xi32> to vector<256xi32>
    %19 = vector.shape_cast %18 : vector<256xi32> to vector<1x256xi32>
    %20 = vector.broadcast %19 : vector<1x256xi32> to vector<16x256xi32>
    %21 = arith.cmpi eq, %6, %20 : vector<16x256xi32>
    %22 = arith.extui %21 : vector<16x256xi1> to vector<16x256xi32>
    %23 = arith.sitofp %22 : vector<16x256xi32> to vector<16x256xf32>
    %cst_18 = arith.constant dense<0.000000e+00> : vector<4x256xf32>
    %24 = tpu.matmul %0, %23, %cst_18 {dimension_numbers = #tpu.dot_dimension_numbers<[0], [0], [1], [1], [0, 1, 1, 1], [], []>} : vector<16x4xf32>, vector<16x256xf32>, vector<4x256xf32> -> vector<4x256xf32>
    %c0_19 = arith.constant 0 : index
    %c0_20 = arith.constant 0 : index
    %c0_21 = arith.constant 0 : index
    %25 = vector.load %arg5[%c0_19, %c0_20, %c0_21] : memref<2x4x256xf32, #tpu.memory_space<vmem>>, vector<1x4x256xf32>
    %26 = vector.shape_cast %25 : vector<1x4x256xf32> to vector<4x256xf32>
    %27 = vector.shape_cast %24 : vector<4x256xf32> to vector<1x4x256xf32>
    tpu.vector_store %arg5[%c0_19, %c0_20, %c0_21], %27 {strides = array<i32>} : memref<2x4x256xf32, #tpu.memory_space<vmem>>, vector<1x4x256xf32>,
    %c0_22 = arith.constant 0 : index
    %c0_23 = arith.constant 0 : index
    %c0_24 = arith.constant 0 : index
    %28 = vector.load %arg6[%c0_22, %c0_23, %c0_24] : memref<2x1x256xi32, #tpu.memory_space<vmem>>, vector<1x1x256xi32>
    %29 = vector.shape_cast %28 : vector<1x1x256xi32> to vector<1x256xi32>
    %30 = vector.shape_cast %19 : vector<1x256xi32> to vector<1x1x256xi32>
    tpu.vector_store %arg6[%c0_22, %c0_23, %c0_24], %30 {strides = array<i32>} : memref<2x1x256xi32, #tpu.memory_space<vmem>>, vector<1x1x256xi32>,
    %31 = arith.subf %24, %8 : vector<4x256xf32>
    %c0_25 = arith.constant 0 : index
    %c0_26 = arith.constant 0 : index
    %c0_27 = arith.constant 0 : index
    %c0_28 = arith.constant 0 : index
    %32 = vector.load %arg7[%c0_25, %c0_26, %c0_27, %c0_28] : memref<1x1x1x1xf32, #tpu.memory_space<vmem>>, vector<1x1x1x1xf32>
    %33 = vector.shape_cast %32 : vector<1x1x1x1xf32> to vector<1x1xf32>
    %34 = arith.mulf %31, %31 : vector<4x256xf32>
    %35 = vector.shape_cast %34 : vector<4x256xf32> to vector<1x4x256xf32>
    %cst_29 = arith.constant dense<0.000000e+00> : vector<1xf32>
    %36 = vector.multi_reduction <add>, %35, %cst_29 [1, 2] : vector<1x4x256xf32> to vector<1xf32>
    %37 = vector.shape_cast %36 : vector<1xf32> to vector<1x1x1xf32>
    %38 = vector.extract %37[0, 0, 0] : f32 from vector<1x1x1xf32>
    %39 = vector.broadcast %38 : f32 to vector<1x1xf32>
    %40 = arith.addf %33, %39 : vector<1x1xf32>
    %c0_30 = arith.constant 0 : index
    %c0_31 = arith.constant 0 : index
    %c0_32 = arith.constant 0 : index
    %c0_33 = arith.constant 0 : index
    %41 = vector.load %arg7[%c0_30, %c0_31, %c0_32, %c0_33] : memref<1x1x1x1xf32, #tpu.memory_space<vmem>>, vector<1x1x1x1xf32>
    %42 = vector.shape_cast %41 : vector<1x1x1x1xf32> to vector<1x1xf32>
    %43 = vector.shape_cast %40 : vector<1x1xf32> to vector<1x1x1x1xf32>
    tpu.vector_store %arg7[%c0_30, %c0_31, %c0_32, %c0_33], %43 {strides = array<i32>} : memref<1x1x1x1xf32, #tpu.memory_space<vmem>>, vector<1x1x1x1xf32>,
    %c0_34 = arith.constant 0 : index
    %c0_35 = arith.constant 0 : index
    %c0_36 = arith.constant 0 : index
    %c0_37 = arith.constant 0 : index
    %44 = vector.load %arg8[%c0_34, %c0_35, %c0_36, %c0_37] : memref<1x1x16x1xf32, #tpu.memory_space<vmem>>, vector<1x1x16x1xf32>
    %45 = vector.shape_cast %44 : vector<1x1x16x1xf32> to vector<16x1xf32>
    %cst_38 = arith.constant dense<0.000000e+00> : vector<16xf32>
    %46 = vector.multi_reduction <add>, %23, %cst_38 [1] : vector<16x256xf32> to vector<16xf32>
    %47 = vector.shape_cast %46 : vector<16xf32> to vector<16x1xf32>
    %48 = arith.addf %45, %47 : vector<16x1xf32>
    %c0_39 = arith.constant 0 : index
    %c0_40 = arith.constant 0 : index
    %c0_41 = arith.constant 0 : index
    %c0_42 = arith.constant 0 : index
    %49 = vector.load %arg8[%c0_39, %c0_40, %c0_41, %c0_42] : memref<1x1x16x1xf32, #tpu.memory_space<vmem>>, vector<1x1x16x1xf32>
    %50 = vector.shape_cast %49 : vector<1x1x16x1xf32> to vector<16x1xf32>
    %51 = vector.shape_cast %48 : vector<16x1xf32> to vector<1x1x16x1xf32>
    tpu.vector_store %arg8[%c0_39, %c0_40, %c0_41, %c0_42], %51 {strides = array<i32>} : memref<1x1x16x1xf32, #tpu.memory_space<vmem>>, vector<1x1x16x1xf32>,
    %c1 = arith.constant 1 : index
    %c0_43 = arith.constant 0 : index
    %c0_44 = arith.constant 0 : index
    %52 = vector.load %arg2[%c1, %c0_43, %c0_44] : memref<2x4x256xf32, #tpu.memory_space<vmem>>, vector<1x4x256xf32>
    %53 = vector.shape_cast %52 : vector<1x4x256xf32> to vector<4x256xf32>
    %cst_45 = arith.constant dense<0.000000e+00> : vector<16x256xf32>
    %54 = tpu.matmul %0, %53, %cst_45 {dimension_numbers = #tpu.dot_dimension_numbers<[1], [0], [0], [1], [0, 0, 1, 1], [], []>} : vector<16x4xf32>, vector<4x256xf32>, vector<16x256xf32> -> vector<16x256xf32>
    %55 = vector.broadcast %1 : vector<16x1xf32> to vector<16x256xf32>
    %56 = arith.subf %55, %54 : vector<16x256xf32>
    %cst_46 = arith.constant dense<0x7F800000> : vector<256xf32>
    %57 = vector.multi_reduction <minimumf>, %56, %cst_46 [0] : vector<16x256xf32> to vector<256xf32>
    %58 = vector.shape_cast %57 : vector<256xf32> to vector<1x256xf32>
    %59 = vector.broadcast %58 : vector<1x256xf32> to vector<16x256xf32>
    %60 = arith.cmpf oeq, %56, %59 : vector<16x256xf32>
    %c16_i32_47 = arith.constant 16 : i32
    %61 = vector.broadcast %c16_i32_47 : i32 to vector<16x256xi32>
    %62 = arith.select %60, %6, %61 : vector<16x256xi1>, vector<16x256xi32>
    %cst_48 = arith.constant dense<2147483647> : vector<256xi32>
    %63 = vector.multi_reduction <minsi>, %62, %cst_48 [0] : vector<16x256xi32> to vector<256xi32>
    %64 = vector.shape_cast %63 : vector<256xi32> to vector<1x256xi32>
    %65 = vector.broadcast %64 : vector<1x256xi32> to vector<16x256xi32>
    %66 = arith.cmpi eq, %6, %65 : vector<16x256xi32>
    %67 = arith.extui %66 : vector<16x256xi1> to vector<16x256xi32>
    %68 = arith.sitofp %67 : vector<16x256xi32> to vector<16x256xf32>
    %cst_49 = arith.constant dense<0.000000e+00> : vector<4x256xf32>
    %69 = tpu.matmul %0, %68, %cst_49 {dimension_numbers = #tpu.dot_dimension_numbers<[0], [0], [1], [1], [0, 1, 1, 1], [], []>} : vector<16x4xf32>, vector<16x256xf32>, vector<4x256xf32> -> vector<4x256xf32>
    %c1_50 = arith.constant 1 : index
    %c0_51 = arith.constant 0 : index
    %c0_52 = arith.constant 0 : index
    %70 = vector.load %arg5[%c1_50, %c0_51, %c0_52] : memref<2x4x256xf32, #tpu.memory_space<vmem>>, vector<1x4x256xf32>
    %71 = vector.shape_cast %70 : vector<1x4x256xf32> to vector<4x256xf32>
    %72 = vector.shape_cast %69 : vector<4x256xf32> to vector<1x4x256xf32>
    tpu.vector_store %arg5[%c1_50, %c0_51, %c0_52], %72 {strides = array<i32>} : memref<2x4x256xf32, #tpu.memory_space<vmem>>, vector<1x4x256xf32>,
    %c1_53 = arith.constant 1 : index
    %c0_54 = arith.constant 0 : index
    %c0_55 = arith.constant 0 : index
    %73 = vector.load %arg6[%c1_53, %c0_54, %c0_55] : memref<2x1x256xi32, #tpu.memory_space<vmem>>, vector<1x1x256xi32>
    %74 = vector.shape_cast %73 : vector<1x1x256xi32> to vector<1x256xi32>
    %75 = vector.shape_cast %64 : vector<1x256xi32> to vector<1x1x256xi32>
    tpu.vector_store %arg6[%c1_53, %c0_54, %c0_55], %75 {strides = array<i32>} : memref<2x1x256xi32, #tpu.memory_space<vmem>>, vector<1x1x256xi32>,
    %76 = arith.subf %69, %53 : vector<4x256xf32>
    %c0_56 = arith.constant 0 : index
    %c0_57 = arith.constant 0 : index
    %c0_58 = arith.constant 0 : index
    %c0_59 = arith.constant 0 : index
    %77 = vector.load %arg7[%c0_56, %c0_57, %c0_58, %c0_59] : memref<1x1x1x1xf32, #tpu.memory_space<vmem>>, vector<1x1x1x1xf32>
    %78 = vector.shape_cast %77 : vector<1x1x1x1xf32> to vector<1x1xf32>
    %79 = arith.mulf %76, %76 : vector<4x256xf32>
    %80 = vector.shape_cast %79 : vector<4x256xf32> to vector<1x4x256xf32>
    %cst_60 = arith.constant dense<0.000000e+00> : vector<1xf32>
    %81 = vector.multi_reduction <add>, %80, %cst_60 [1, 2] : vector<1x4x256xf32> to vector<1xf32>
    %82 = vector.shape_cast %81 : vector<1xf32> to vector<1x1x1xf32>
    %83 = vector.extract %82[0, 0, 0] : f32 from vector<1x1x1xf32>
    %84 = vector.broadcast %83 : f32 to vector<1x1xf32>
    %85 = arith.addf %78, %84 : vector<1x1xf32>
    %c0_61 = arith.constant 0 : index
    %c0_62 = arith.constant 0 : index
    %c0_63 = arith.constant 0 : index
    %c0_64 = arith.constant 0 : index
    %86 = vector.load %arg7[%c0_61, %c0_62, %c0_63, %c0_64] : memref<1x1x1x1xf32, #tpu.memory_space<vmem>>, vector<1x1x1x1xf32>
    %87 = vector.shape_cast %86 : vector<1x1x1x1xf32> to vector<1x1xf32>
    %88 = vector.shape_cast %85 : vector<1x1xf32> to vector<1x1x1x1xf32>
    tpu.vector_store %arg7[%c0_61, %c0_62, %c0_63, %c0_64], %88 {strides = array<i32>} : memref<1x1x1x1xf32, #tpu.memory_space<vmem>>, vector<1x1x1x1xf32>,
    %c0_65 = arith.constant 0 : index
    %c0_66 = arith.constant 0 : index
    %c0_67 = arith.constant 0 : index
    %c0_68 = arith.constant 0 : index
    %89 = vector.load %arg8[%c0_65, %c0_66, %c0_67, %c0_68] : memref<1x1x16x1xf32, #tpu.memory_space<vmem>>, vector<1x1x16x1xf32>
    %90 = vector.shape_cast %89 : vector<1x1x16x1xf32> to vector<16x1xf32>
    %cst_69 = arith.constant dense<0.000000e+00> : vector<16xf32>
    %91 = vector.multi_reduction <add>, %68, %cst_69 [1] : vector<16x256xf32> to vector<16xf32>
    %92 = vector.shape_cast %91 : vector<16xf32> to vector<16x1xf32>
    %93 = arith.addf %90, %92 : vector<16x1xf32>
    %c0_70 = arith.constant 0 : index
    %c0_71 = arith.constant 0 : index
    %c0_72 = arith.constant 0 : index
    %c0_73 = arith.constant 0 : index
    %94 = vector.load %arg8[%c0_70, %c0_71, %c0_72, %c0_73] : memref<1x1x16x1xf32, #tpu.memory_space<vmem>>, vector<1x1x16x1xf32>
    %95 = vector.shape_cast %94 : vector<1x1x16x1xf32> to vector<16x1xf32>
    %96 = vector.shape_cast %93 : vector<16x1xf32> to vector<1x1x16x1xf32>
    tpu.vector_store %arg8[%c0_70, %c0_71, %c0_72, %c0_73], %96 {strides = array<i32>} : memref<1x1x16x1xf32, #tpu.memory_space<vmem>>, vector<1x1x16x1xf32>,
    return
  }
  func.func @transform_0(%arg0: i32, %arg1: i32) -> (i32, i32, i32) {
    %c0_i32 = arith.constant 0 : i32
    %c0_i32_0 = arith.constant 0 : i32
    return %arg0, %c0_i32, %arg1 : i32, i32, i32
  }
  func.func @transform_1(%arg0: i32, %arg1: i32) -> (i32, i32) {
    %c0_i32 = arith.constant 0 : i32
    %c0_i32_0 = arith.constant 0 : i32
    %c0_i32_1 = arith.constant 0 : i32
    return %c0_i32, %c0_i32_0 : i32, i32
  }
  func.func @transform_2(%arg0: i32, %arg1: i32) -> (i32, i32) {
    %c0_i32 = arith.constant 0 : i32
    %c0_i32_0 = arith.constant 0 : i32
    %c0_i32_1 = arith.constant 0 : i32
    return %c0_i32, %c0_i32_0 : i32, i32
  }
  func.func @transform_3(%arg0: i32, %arg1: i32) -> (i32, i32, i32) {
    %c0_i32 = arith.constant 0 : i32
    %c0_i32_0 = arith.constant 0 : i32
    return %arg0, %c0_i32, %arg1 : i32, i32, i32
  }
  func.func @transform_4(%arg0: i32, %arg1: i32) -> (i32, i32, i32) {
    %c0_i32 = arith.constant 0 : i32
    %c0_i32_0 = arith.constant 0 : i32
    return %arg0, %c0_i32, %arg1 : i32, i32, i32
  }
  func.func @transform_5(%arg0: i32, %arg1: i32) -> (i32, i32, i32, i32) {
    %c0_i32 = arith.constant 0 : i32
    %c0_i32_0 = arith.constant 0 : i32
    %c0_i32_1 = arith.constant 0 : i32
    return %arg0, %arg1, %c0_i32, %c0_i32_0 : i32, i32, i32, i32
  }
  func.func @transform_6(%arg0: i32, %arg1: i32) -> (i32, i32, i32, i32) {
    %c0_i32 = arith.constant 0 : i32
    %c0_i32_0 = arith.constant 0 : i32
    %c0_i32_1 = arith.constant 0 : i32
    return %arg0, %arg1, %c0_i32, %c0_i32_0 : i32, i32, i32, i32
  }
}

</mosaic_0001>

<bundles_post_ra>
// kernel: tpu_custom_call.1
= control target key start
LH: loop header
LB: loop body
LE: loop exit
PB: predicated region body
PF: predicated region fallthrough
CT: control target
= control target key end

     0   :  { %12 = vsyncpa [#allocation3], 0  ;;  %vm42_vm0 = vcmask 1043456   ;;  %v803_v3 = vmov 0.0   ;;  %s1061_s0 = inlined_call_operand.vmem [shape: f32[2,4,256], index: 0, kind: input, shape index: {}]   ;;  %s1062_s1 = inlined_call_operand.vmem [shape: f32[16,4], index: 1, kind: input, shape index: {}]   ;;  %s1063_s2 = inlined_call_operand.vmem [shape: f32[16,1], index: 2, kind: input, shape index: {}]   ;;  %s1064_s3 = inlined_call_operand.hbm [shape: f32[2,4,256], index: 3, kind: output, shape index: {0}]   ;;  %s1065_s4 = inlined_call_operand.hbm [shape: s32[2,1,256], index: 4, kind: output, shape index: {1}]   ;;  %s1066_s5 = inlined_call_operand.hbm [shape: f32[1,1,1,1], index: 5, kind: output, shape index: {2}]   ;;  %s1067_s6 = inlined_call_operand.vmem [shape: f32[1,1,16,1], index: 6, kind: output, shape index: {3}]  }
   0x1   :  { %v852_v0 = vld [vmem:[%s1061_s0] sm:$0xff]  ;;  %111 = vmatprep.mubr.f32.mxu0 %v803_v3 }
   0x2   :  { %v857_v1 = vld [vmem:[%s1062_s1] sm:$0xff]  ;;  %v861_v2 = vcombine.high %v852_v0, %v852_v0 }
   0x3   :  { %v22_v4 = vld [vmem:[%s1063_s2] sm:$0xff]  ;;  %194 = vxpose.xlu1.b32.start [1/2] (short) (narrow) %v857_v1, 8 }
   0x4   :  { %13 = vsyncpa [#allocation5], 0  ;;  %vm35_vm1 = vcmask 31744   ;;  %v804_v5 = vmov 0   ;;  %294 = vmatprep.mubr.f32.mxu1 %v803_v3  ;;  %680 = vmatprep.subr.msk.mxu0 %vm42_vm0, %v861_v2  ;;  %v876_v6 = vld [vmem:[%s1062_s1 + $0x8] sm:$0xff]  ;;  %v29_v21 = vlaneseq  ;;  %s807_s23 = smov [#allocation4]  }
   0x5   :  { %730 = vset.pattern.permute.xlu0 %v804_v5  ;;  %681 = vmatpush1.msk.msra.mxu0 %vm42_vm0, %v852_v0  ;;  %v23_v7 = vld [vmem:[%s1063_s2 + $0x8] sm:$0xff]  ;;  %v805_v44 = vmov 1966171168   ;;  %s648_s24 = sshll.u32 %s807_s23, 4  ;;  %s808_s25 = smov [#allocation2]   ;;  %s649_s24 = int_to_ptr.vmem [resolvable:$true] %s648_s24 }
   0x6   :  { %126 = vperm.xlu0 %730, %v22_v4   ;;  %682 = vmatmul.mubr.msk.f32.vlgmr.msra.gmra.mrb[0].mxu0 %vm35_vm1, %v857_v1  ;;  %v897_v26 = vshrl.u32 %v29_v21, 7  ;;  %v308_v45 = vunpack.c.l.s4 %v805_v44  ;;  %v909_v54 = vld [vmem:[%s1061_s0 + $0x8] sm:$0xff]  ;;  %v806_v4 = vmov 1.0|1.0   ;;  %s636_s26 = sshll.u32 %s808_s25, 4  ;;  %s733_s27 = scalar_lea.vmem %s649_s24, 64  ;;  %s637_s26 = int_to_ptr.vmem [resolvable:$true] %s636_s26 }
   0x7   :  { %195 = vxpose.xlu1.b32.end [2/2] (short) (narrow) %v876_v6, 8  ;;  %117 = vmatprep.mubr.f32.mxu0 %v803_v3  ;;  %v918_v58 = vcombine.high %v909_v54, %v909_v54  ;;  %p734_p0 = scmp.ne.s32.totalorder %s649_s24, %s733_s27  ;;  %p738_p1 = scmp.lt.s32.totalorder %s649_s24, %s649_s24 }
   0x8   :  { %v900_v31 = vadd.s32 8, %v897_v26  ;;  %v309_v50 = vunpack.c.0.s8 %v308_v45  ;;  %p739_p2 = scmp.lt.s32.totalorder %s733_s27, %s733_s27 }
   0xa   :  { %131 = vperm.xlu0 %730, %v23_v7   ;;  %683 = vmatmul.mubr.msk.f32.gmra.mrb[2].mxu0 %vm35_vm1, %v876_v6  ;;  %v912_v56 = vsub.s32 %v309_v50, %v897_v26  ;;  %p740_p3 = por %p739_p2, %p738_p1 }
   0xb   :  { %568 = vmatprep.mubr.f32.mxu0 %v803_v3 }
   0xc   :  { %p741_p4 = pnand %p740_p3, %p734_p0 }
  0x85   :  { %v888_v8 = vpop.permute.xlu0 %126 }
  0x89   :  { %v890_v11 = vpop.permute.xlu0 %131 }
  0xd9   :  { %v113_v9 = vpop.f32.mrb[0].mxu0 }
  0xda   :  { %v115_v10 = vpop.f32.mrb[1].mxu0  ;;  %v134_v13 = vsub.f32 %v888_v8, %v113_v9 }
  0xdb   :  { %v135_v16 = vsub.f32 %v888_v8, %v115_v10  ;;  %v929_v10 = vpop.trf.xlu1 }
  0xdd   :  { %v119_v12 = vpop.f32.mrb[2].mxu0 }
  0xde   :  { %v136_v14 = vsub.f32 %v890_v11, %v119_v12  ;;  %v121_v15 = vpop.f32.mrb[3].mxu0 }
  0xdf   :  { %v137_v17 = vsub.f32 %v890_v11, %v121_v15 }
  0xe0   :  { %v138_v18 = vmin.f32 %v134_v13, %v136_v14 }
  0xe1   :  { %v145_v19 = vmin.f32 %v135_v16, %v137_v17 }
  0xe2   :  { %v139_v20 = vrot.slane %v138_v18, 4 }
  0xe3   :  { %v146_v22 = vrot.slane %v145_v19, 4 }
  0xe4   :  { %v140_v23 = vmin.f32 %v138_v18, %v139_v20 }
  0xe5   :  { %v147_v24 = vmin.f32 %v145_v19, %v146_v22 }
  0xe6   :  { %v141_v25 = vrot.slane %v140_v23, 2 }
  0xe7   :  { %v148_v27 = vrot.slane %v147_v24, 2 }
  0xe8   :  { %v142_v28 = vmin.f32 %v140_v23, %v141_v25 }
  0xe9   :  { %v149_v29 = vmin.f32 %v147_v24, %v148_v27 }
  0xea   :  { %v143_v30 = vrot.slane %v142_v28, 1 }
  0xeb   :  { %v150_v32 = vrot.slane %v149_v29, 1 }
  0xec   :  { %v144_v33 = vmin.f32 %v142_v28, %v143_v30 }
  0xed   :  { %v151_v34 = vmin.f32 %v149_v29, %v150_v32 }
  0xee   :  { %vm152_vm2 = vcmp.eq.f32.partialorder %v134_v13, %v144_v33  ;;  %vm154_vm3 = vcmp.eq.f32.partialorder %v136_v14, %v144_v33 }
  0xef   :  { %v156_v35 = vsel %vm152_vm2, %v897_v26, 16  ;;  %v158_v36 = vsel %vm154_vm3, %v900_v31, 16  ;;  %vm153_vm4 = vcmp.eq.f32.partialorder %v135_v16, %v151_v34  ;;  %vm155_vm5 = vcmp.eq.f32.partialorder %v137_v17, %v151_v34 }
  0xf0   :  { %vm160_vm6 = vcmp.lt.s32.totalorder %v156_v35, %v158_v36  ;;  %v157_v37 = vsel %vm153_vm4, %v897_v26, 16  ;;  %v159_v38 = vsel %vm155_vm5, %v900_v31, 16 }
  0xf1   :  { %v161_v39 = vsel %vm160_vm6, %v156_v35, %v158_v36  ;;  %vm171_vm7 = vcmp.lt.s32.totalorder %v157_v37, %v159_v38  ;;  %vm226_vm6 = vcmask 130048  }
  0xf2   :  { %v162_v40 = vrot.slane %v161_v39, 4  ;;  %v172_v41 = vsel %vm171_vm7, %v157_v37, %v159_v38  ;;  %vm932_vm7 = vcmp.lt.s32.totalorder %v29_v21, 256 }
  0xf3   :  { %v173_v42 = vrot.slane %v172_v41, 4 }
  0xf4   :  { %vm163_vm8 = vcmp.lt.s32.totalorder %v161_v39, %v162_v40 }
  0xf5   :  { %v164_v43 = vsel %vm163_vm8, %v161_v39, %v162_v40  ;;  %vm174_vm9 = vcmp.lt.s32.totalorder %v172_v41, %v173_v42 }
  0xf6   :  { %v165_v46 = vrot.slane %v164_v43, 2  ;;  %v175_v47 = vsel %vm174_vm9, %v172_v41, %v173_v42 }
  0xf7   :  { %v176_v48 = vrot.slane %v175_v47, 2 }
  0xf8   :  { %vm166_vm10 = vcmp.lt.s32.totalorder %v164_v43, %v165_v46 }
  0xf9   :  { %vm177_vm11 = vcmp.lt.s32.totalorder %v175_v47, %v176_v48  ;;  %v167_v49 = vsel %vm166_vm10, %v164_v43, %v165_v46 }
  0xfa   :  { %v178_v51 = vsel %vm177_vm11, %v175_v47, %v176_v48  ;;  %v168_v52 = vrot.slane %v167_v49, 1 }
  0xfb   :  { %v179_v53 = vrot.slane %v178_v51, 1 }
  0xfc   :  { %vm169_vm12 = vcmp.lt.s32.totalorder %v167_v49, %v168_v52 }
  0xfd   :  { %vm180_vm13 = vcmp.lt.s32.totalorder %v178_v51, %v179_v53  ;;  %v170_v55 = vsel %vm169_vm12, %v167_v49, %v168_v52 }
  0xfe   :  { %v181_v57 = vsel %vm180_vm13, %v178_v51, %v179_v53  ;;  %vm182_vm14 = vcmp.eq.s32.totalorder %v897_v26, %v170_v55  ;;  %vm184_vm15 = vcmp.eq.s32.totalorder %v900_v31, %v170_v55 }
  0xff   :  { %vm183_vm2 = vcmp.eq.s32.totalorder %v897_v26, %v181_v57  ;;  %vm185_vm3 = vcmp.eq.s32.totalorder %v900_v31, %v181_v57  ;;  %v306_v59 = vcombine.low %v170_v55, %v181_v57  ;;  %v684_v60 = vsel %vm182_vm14, 1.0, %v803_v3  ;;  %vm709_vm5 = vmpackc.low %vm184_vm15, %vm182_vm14 }
 0x100   :  { %vm707_vm4 = vmpackc.low %vm185_vm3, %vm183_vm2  ;;  %v685_v61 = vsel %vm183_vm2, 1.0, %v803_v3  ;;  %v686_v62 = vsel %vm184_vm15, 1.0, %v803_v3  ;;  %v687_v63 = vsel %vm185_vm3, 1.0, %v803_v3 }
 0x101   :  { %708 = vmatprep.subr.msk.bf16.mxu1 %vm707_vm4, %v806_v4  ;;  %v313_v5 = vrot.slane %v306_v59, %v912_v56  ;;  %v349_v7 = vadd.f32 %v685_v61, %v684_v60  ;;  %v352_v9 = vadd.f32 %v687_v63, %v686_v62 }
 0x102   :  { %710 = vmatpush1.bf16.msk.msra.mxu1 %vm709_vm5, %v806_v4 }
 0x103   :  { %694 = vmatprep.subr.msk.mxu1 %vm42_vm0, %v918_v58  ;;  %v320_v13 = vrot.slane %v313_v5, %v912_v56 }
 0x105   :  { %692 = vmatmul.mubr.msk.f32.vlgmr.msra.gmra.mrb[0].mxu1 %vm226_vm6, %v929_v10  ;;  %325 = vst.msk [vmem:[#allocation4] sm:$0x3] %vm932_vm7, %v320_v13 }
 0x106   :  { %695 = vmatpush1.msk.msra.mxu1 %vm42_vm0, %v909_v54  ;;  %431 = vmatprep.mubr.f32.mxu1 %v803_v3 }
 0x109   :  { %696 = vmatmul.mubr.msk.f32.vlgmr.msra.gmra.mrb[2].mxu1 %vm35_vm1, %v857_v1 }
 0x10a   :  { %437 = vmatprep.mubr.f32.mxu1 %v803_v3 }
 0x10d   :  { %697 = vmatmul.mubr.msk.f32.gmra.mrb[4].mxu1 %vm35_vm1, %v876_v6  ;;  %vm26_vm1 = vcmask 7168  }
 0x10e   :  { %27 = vst.msk [vmem:[%s1067_s6] sm:$0xff] %vm26_vm1, %v803_v3  ;;  %28 = vst.msk [vmem:[%s1067_s6 + $0x8] sm:$0xff] %vm26_vm1, %v803_v3 }
 0x1d8   :  { %v296_v14 = vpop.f32.mrb[0].mxu1 }
 0x1d9   :  { %v327_v15 = vsub.f32 %v296_v14, %v852_v0  ;;  %v298_v16 = vpop.f32.mrb[1].mxu1 }
 0x1da   :  { %v303_v17 = vcombine.low %v296_v14, %v298_v16  ;;  %v328_v18 = vsub.f32 %v298_v16, %v861_v2 }
 0x1db   :  { %v330_v19 = vmul.f32 %v327_v15, %v327_v15 }
 0x1dc   :  { %305 = vst [vmem:[#allocation2] sm:$0xff] %v303_v17  ;;  %v331_v20 = vmul.f32 %v328_v18, %v328_v18  ;;  %v433_v21 = vpop.f32.mrb[2].mxu1  ;;  %v347_v18 = vld [vmem:[%s1067_s6] sm:$0xff] }
 0x1dd   :  { %v435_v22 = vpop.f32.mrb[3].mxu1  ;;  %v332_v23 = vsel %vm42_vm0, %v330_v19, 0.0  ;;  %v444_v6 = vsub.f32 %v888_v8, %v433_v21 }
 0x1de   :  { %v333_v1 = vsel %vm42_vm0, %v331_v20, 0.0  ;;  %v445_v28 = vsub.f32 %v888_v8, %v435_v22 }
 0x1df   :  { %v334_v24 = vadd.f32 %v333_v1, %v332_v23 }
 0x1e0   :  { %v439_v25 = vpop.f32.mrb[4].mxu1 }
 0x1e1   :  { %v446_v27 = vsub.f32 %v890_v11, %v439_v25  ;;  %v441_v0 = vpop.f32.mrb[5].mxu1  ;;  %335 = vadd.xlane.f32.xlu0 %v334_v24 }
 0x1e2   :  { %v447_v2 = vsub.f32 %v890_v11, %v441_v0 }
 0x1e3   :  { %v448_v29 = vmin.f32 %v444_v6, %v446_v27 }
 0x1e4   :  { %v455_v30 = vmin.f32 %v445_v28, %v447_v2 }
 0x1e5   :  { %v449_v32 = vrot.slane %v448_v29, 4  ;;  %350 = vadd.xlane.f32.xlu0 %v349_v7 }
 0x1e6   :  { %v456_v33 = vrot.slane %v455_v30, 4 }
 0x1e7   :  { %v450_v34 = vmin.f32 %v448_v29, %v449_v32 }
 0x1e8   :  { %v457_v35 = vmin.f32 %v455_v30, %v456_v33 }
 0x1e9   :  { %v451_v36 = vrot.slane %v450_v34, 2  ;;  %353 = vadd.xlane.f32.xlu0 %v352_v9 }
 0x1ea   :  { %v458_v37 = vrot.slane %v457_v35, 2 }
 0x1eb   :  { %v452_v38 = vmin.f32 %v450_v34, %v451_v36 }
 0x1ec   :  { %v459_v39 = vmin.f32 %v457_v35, %v458_v37 }
 0x1ed   :  { %v453_v8 = vrot.slane %v452_v38, 1 }
 0x1ee   :  { %v460_v11 = vrot.slane %v459_v39, 1 }
 0x1ef   :  { %v454_v40 = vmin.f32 %v452_v38, %v453_v8 }
 0x1f0   :  { %v461_v41 = vmin.f32 %v459_v39, %v460_v11 }
 0x1f1   :  { %vm462_vm8 = vcmp.eq.f32.partialorder %v444_v6, %v454_v40  ;;  %vm464_vm9 = vcmp.eq.f32.partialorder %v446_v27, %v454_v40 }
 0x1f2   :  { %v466_v42 = vsel %vm462_vm8, %v897_v26, 16  ;;  %v468_v43 = vsel %vm464_vm9, %v900_v31, 16  ;;  %vm463_vm10 = vcmp.eq.f32.partialorder %v445_v28, %v461_v41  ;;  %vm465_vm11 = vcmp.eq.f32.partialorder %v447_v2, %v461_v41 }
 0x1f3   :  { %vm470_vm12 = vcmp.lt.s32.totalorder %v466_v42, %v468_v43  ;;  %v467_v44 = vsel %vm463_vm10, %v897_v26, 16  ;;  %v469_v45 = vsel %vm465_vm11, %v900_v31, 16 }
 0x1f4   :  { %v471_v46 = vsel %vm470_vm12, %v466_v42, %v468_v43  ;;  %vm481_vm13 = vcmp.lt.s32.totalorder %v467_v44, %v469_v45 }
 0x1f5   :  { %v472_v47 = vrot.slane %v471_v46, 4  ;;  %v482_v48 = vsel %vm481_vm13, %v467_v44, %v469_v45 }
 0x1f6   :  { %v483_v49 = vrot.slane %v482_v48, 4 }
 0x1f7   :  { %vm473_vm14 = vcmp.lt.s32.totalorder %v471_v46, %v472_v47 }
 0x1f8   :  { %v474_v50 = vsel %vm473_vm14, %v471_v46, %v472_v47  ;;  %vm484_vm15 = vcmp.lt.s32.totalorder %v482_v48, %v483_v49  ;;  %vm24_vm14 = vcmask 0  }
 0x1f9   :  { %v475_v51 = vrot.slane %v474_v50, 2  ;;  %v485_v52 = vsel %vm484_vm15, %v482_v48, %v483_v49  ;;  %25 = vst.msk [vmem:[#allocation6] sm:$0x1] %vm24_vm14, %v803_v3 }
 0x1fa   :  { %v486_v53 = vrot.slane %v485_v52, 2 }
 0x1fb   :  { %vm476_vm2 = vcmp.lt.s32.totalorder %v474_v50, %v475_v51 }
 0x1fc   :  { %v477_v55 = vsel %vm476_vm2, %v474_v50, %v475_v51  ;;  %vm487_vm3 = vcmp.lt.s32.totalorder %v485_v52, %v486_v53 }
 0x1fd   :  { %v478_v57 = vrot.slane %v477_v55, 1  ;;  %v488_v59 = vsel %vm487_vm3, %v485_v52, %v486_v53 }
 0x1fe   :  { %v489_v60 = vrot.slane %v488_v59, 1 }
 0x1ff   :  { %vm479_vm4 = vcmp.lt.s32.totalorder %v477_v55, %v478_v57 }
 0x200   :  { %v480_v61 = vsel %vm479_vm4, %v477_v55, %v478_v57  ;;  %vm490_vm5 = vcmp.lt.s32.totalorder %v488_v59, %v489_v60  ;;  %v329_v6 = vld [vmem:[#allocation6] sm:$0x1] }
 0x201   :  { %v491_v62 = vsel %vm490_vm5, %v488_v59, %v489_v60  ;;  %vm492_vm8 = vcmp.eq.s32.totalorder %v897_v26, %v480_v61  ;;  %vm494_vm9 = vcmp.eq.s32.totalorder %v900_v31, %v480_v61 }
 0x202   :  { %vm493_vm10 = vcmp.eq.s32.totalorder %v897_v26, %v491_v62  ;;  %vm495_vm11 = vcmp.eq.s32.totalorder %v900_v31, %v491_v62  ;;  %v581_v63 = vcombine.low %v480_v61, %v491_v62  ;;  %v698_v5 = vsel %vm492_vm8, 1.0, %v803_v3  ;;  %vm713_vm13 = vmpackc.low %vm494_vm9, %vm492_vm8 }
 0x203   :  { %vm711_vm12 = vmpackc.low %vm495_vm11, %vm493_vm10  ;;  %v699_v7 = vsel %vm493_vm10, 1.0, %v803_v3  ;;  %v700_v9 = vsel %vm494_vm9, 1.0, %v803_v3  ;;  %v701_v13 = vsel %vm495_vm11, 1.0, %v803_v3 }
 0x204   :  { %712 = vmatprep.subr.msk.bf16.mxu0 %vm711_vm12, %v806_v4  ;;  %v588_v14 = vrot.slane %v581_v63, %v912_v56  ;;  %v621_v15 = vadd.f32 %v699_v7, %v698_v5  ;;  %v624_v16 = vadd.f32 %v701_v13, %v700_v9 }
 0x205   :  { %714 = vmatpush1.bf16.msk.msra.mxu0 %vm713_vm13, %v806_v4 }
 0x206   :  { %622 = vadd.xlane.f32.xlu0 %v621_v15  ;;  %v595_v26 = vrot.slane %v588_v14, %v912_v56 }
 0x208   :  { %706 = vmatmul.mubr.msk.f32.vlgmr.msra.gmra.mrb[4].mxu0 %vm226_vm6, %v929_v10  ;;  %597 = vst.msk [vmem:[#allocation4 + $0x2] sm:$0x3] %vm932_vm7, %v595_v26  ;;  %v348_v10 = vld [vmem:[%s1067_s6 + $0x8] sm:$0xff] }
 0x26e   :  { %v336_v31 = vpop.xlane.xlu0 %335 }
 0x26f   :  { %v337_v17 = vrot.slane %v336_v31, 4 }
 0x271   :  { %v338_v4 = vadd.f32 %v337_v17, %v336_v31 }
 0x272   :  { %v351_v19 = vpop.xlane.xlu0 %350 }
 0x273   :  { %v339_v20 = vrot.slane %v338_v4, 2  ;;  %v355_v56 = vadd.f32 %v351_v19, %v347_v18 }
 0x275   :  { %357 = vst.msk [vmem:[%s1067_s6] sm:$0xff] %vm26_vm1, %v355_v56  ;;  %v340_v3 = vadd.f32 %v339_v20, %v338_v4 }
 0x276   :  { %v354_v12 = vpop.xlane.xlu0 %353 }
 0x277   :  { %v356_v21 = vadd.f32 %v354_v12, %v348_v10  ;;  %v341_v22 = vrot.slane %v340_v3, 1 }
 0x279   :  { %358 = vst.msk [vmem:[%s1067_s6 + $0x8] sm:$0xff] %vm26_vm1, %v356_v21  ;;  %v342_v23 = vadd.f32 %v341_v22, %v340_v3 }
 0x27b   :  { %715 = vpush %v342_v23 }
 0x27c   :  { %v619_v1 = vld [vmem:[%s1067_s6] sm:$0xff] }
 0x293   :  { %v623_v24 = vpop.xlane.xlu0 %622 }
 0x294   :  { %v627_v25 = vadd.f32 %v623_v24, %v619_v1 }
 0x296   :  { %629 = vst.msk [vmem:[%s1067_s6] sm:$0xff] %vm26_vm1, %v627_v25 }
 0x2ac   :  { %s716_s22 = spop %715 }
 0x2ad   :  { %v344_v27 = vstv %s716_s22 }
 0x2ae   :  { %v345_v0 = vadd.f32 %v344_v27, %v329_v6 }
 0x2b0   :  { %346 = vst.msk [vmem:[#allocation6] sm:$0x1] %vm24_vm14, %v345_v0 }
 0x2db   :  { %v570_v28 = vpop.f32.mrb[4].mxu0 }
 0x2dc   :  { %v599_v2 = vsub.f32 %v570_v28, %v909_v54  ;;  %v572_v29 = vpop.f32.mrb[5].mxu0 }
 0x2dd   :  { %v577_v30 = vcombine.low %v570_v28, %v572_v29  ;;  %v600_v32 = vsub.f32 %v572_v29, %v918_v58 }
 0x2de   :  { %v602_v33 = vmul.f32 %v599_v2, %v599_v2 }
 0x2df   :  { %580 = vst [vmem:[#allocation2 + $0x8] sm:$0xff] %v577_v30  ;;  %v603_v34 = vmul.f32 %v600_v32, %v600_v32 }
 0x2e0   :  { %v604_v35 = vsel %vm42_vm0, %v602_v33, 0.0 }
 0x2e1   :  { %v605_v36 = vsel %vm42_vm0, %v603_v34, 0.0 }
 0x2e2   :  { %v606_v37 = vadd.f32 %v605_v36, %v604_v35 }
 0x2e4   :  { %607 = vadd.xlane.f32.xlu1 %v606_v37 }
 0x2e8   :  { %625 = vadd.xlane.f32.xlu1 %v624_v16 }
 0x2e9   :  { %744 = shalt.err (!%p741_p4)
}
 0x2ea   :  { %s745_s30 = scalar_lea.hbm %s1065_s4, 64 }
 0x2eb   :  { %p746_p5 = scmp.ne.s32.totalorder %s1065_s4, %s745_s30  ;;  %p749_p6 = scmp.lt.u32.totalorder %s745_s30, %s1065_s4 }
 0x2ed   :  { %p751_p7 = pnand %p749_p6, %p746_p5 }
 0x2ef   :  { %754 = shalt.err (!%p751_p7)
}
 0x2f0   :  { %s809_s8 = smov 32   ;;  %s810_s9 = smov 2  }
 0x2f1   :  { %654 = dma.vmem_to_hbm [thread:$0]  %s649_s24, 64, %s1065_s4, [#allocation5], %s809_s8, %s809_s8, %s810_s9  }
 0x2f2   :  { %s755_s12 = scalar_lea.vmem %s637_s26, 256  ;;  %p760_p9 = scmp.lt.s32.totalorder %s637_s26, %s637_s26 }
 0x2f3   :  { %p756_p8 = scmp.ne.s32.totalorder %s637_s26, %s755_s12  ;;  %p761_p10 = scmp.lt.s32.totalorder %s755_s12, %s755_s12 }
 0x2f5   :  { %p762_p11 = por %p761_p10, %p760_p9 }
 0x2f7   :  { %p763_p12 = pnand %p762_p11, %p756_p8 }
 0x2f9   :  { %766 = shalt.err (!%p763_p12)
}
 0x2fa   :  { %s767_s15 = scalar_lea.hbm %s1064_s3, 256 }
 0x2fb   :  { %p768_p13 = scmp.ne.s32.totalorder %s1064_s3, %s767_s15  ;;  %p771_p0 = scmp.lt.u32.totalorder %s767_s15, %s1064_s3 }
 0x2fd   :  { %p773_p1 = pnand %p771_p0, %p768_p13 }
 0x2ff   :  { %776 = shalt.err (!%p773_p1)
}
 0x300   :  { %s811_s4 = smov 128   ;;  %s812_s20 = smov 8   ;;  %v620_v8 = vld [vmem:[%s1067_s6 + $0x8] sm:$0xff]  ;;  %v601_v44 = vld [vmem:[#allocation6] sm:$0x1] }
 0x301   :  { %642 = dma.vmem_to_hbm [thread:$0]  %s637_s26, 256, %s1064_s3, [#allocation3], %s811_s4, %s811_s4, %s812_s20  }
 0x302   :  { %s813_s3 = smov [#allocation6]  }
 0x303   :  { %s661_s26 = sshll.u32 %s813_s3, 4  ;;  %s662_s26 = int_to_ptr.vmem [resolvable:$true] %s661_s26 }
 0x304   :  { %s777_s29 = scalar_lea.vmem %s662_s26, 16  ;;  %s781_s30 = scalar_lea.vmem %s662_s26, 32 }
 0x305   :  { %p778_p2 = scmp.ne.s32.totalorder %s662_s26, %s777_s29  ;;  %p782_p3 = scmp.lt.s32.totalorder %s662_s26, %s662_s26 }
 0x306   :  { %p783_p4 = scmp.lt.s32.totalorder %s781_s30, %s777_s29 }
 0x308   :  { %p784_p5 = por %p783_p4, %p782_p3 }
 0x30a   :  { %p785_p6 = pnand %p784_p5, %p778_p2 }
 0x371   :  { %v608_v54 = vpop.xlane.xlu1 %607 }
 0x372   :  { %v609_v58 = vrot.slane %v608_v54, 4 }
 0x374   :  { %v610_v38 = vadd.f32 %v609_v58, %v608_v54 }
 0x375   :  { %v626_v39 = vpop.xlane.xlu1 %625 }
 0x376   :  { %v611_v11 = vrot.slane %v610_v38, 2  ;;  %v628_v40 = vadd.f32 %v626_v39, %v620_v8 }
 0x378   :  { %630 = vst.msk [vmem:[%s1067_s6 + $0x8] sm:$0xff] %vm26_vm1, %v628_v40  ;;  %v612_v41 = vadd.f32 %v611_v11, %v610_v38 }
 0x37a   :  { %v613_v42 = vrot.slane %v612_v41, 1 }
 0x37c   :  { %v614_v43 = vadd.f32 %v613_v42, %v612_v41 }
 0x37e   :  { %717 = vpush %v614_v43 }
 0x3af   :  { %s718_s28 = spop %717 }
 0x3b0   :  { %v616_v45 = vstv %s718_s28 }
 0x3b1   :  { %v617_v46 = vadd.f32 %v616_v45, %v601_v44 }
 0x3b3   :  { %618 = vst.msk [vmem:[#allocation6] sm:$0x1] %vm24_vm14, %v617_v46 }
 0x3b4   :  { %788 = shalt.err (!%p785_p6)
}
 0x3b5   :  { %s789_s2 = scalar_lea.hbm %s1066_s5, 16 }
 0x3b6   :  { %p790_p7 = scmp.ne.s32.totalorder %s1066_s5, %s789_s2  ;;  %p793_p8 = scmp.lt.u32.totalorder %s789_s2, %s1066_s5 }
 0x3b8   :  { %p795_p9 = pnand %p793_p8, %p790_p7 }
 0x3ba   :  { %798 = shalt.err (!%p795_p9)
}
 0x3bb   :  { %664 = dma.vmem_to_hbm [thread:$0]  %s662_s26, 16, %s1066_s5, [#allocation5]  }
 0x3bc   :  { %799 = dma.done.wait [#allocation3], 256  }
 0x3bd   :  { %800 = vsyncadd [#allocation3], 4294967040 }
 0x3be   :  { %801 = dma.done.wait [#allocation5], 80  }
 0x3bf   :  { %802 = vsyncadd [#allocation5], 4294967216 }
 0x3c0   :  { %678 = vsyncpa [#allocation3], 1 }
 0x3c1   :  { %679 = vsyncpa [#allocation5], 1 }

</bundles_post_ra>
